<compile_context>
chip_gen: v5e
topology: v5e:2x2
jax: 0.10.0
libtpu: 0.0.40
codegen_flags: <defaults>
</compile_context>

<pallas_src>
import functools

import jax
import jax.numpy as jnp
from jax.experimental import pallas as pl
from jax.experimental.pallas import tpu as pltpu


def _round_up(a, b):
    return (a + b - 1) // b * b


# ---------------------------------------------------------------------------
# Pass 1: y = x @ W + b (bf16 MXU, f32 accumulate) + per-row-tile BN partials.
# Grid: (row tiles [parallel], K tiles [arbitrary reduction]).
# ---------------------------------------------------------------------------
def _linear_stats_kernel(x_ref, w_ref, b_ref,           # inputs
                         y_ref, s1_ref, s2_ref,         # outputs
                         acc_ref,                       # VMEM scratch (f32)
                         *, n_true, tile_n, mask_rows):
    k = pl.program_id(1)

    @pl.when(k == 0)
    def _():
        acc_ref[...] = jnp.zeros_like(acc_ref)

    acc_ref[...] += jnp.dot(x_ref[...], w_ref[...],
                            preferred_element_type=jnp.float32)

    @pl.when(k == pl.num_programs(1) - 1)
    def _():
        y = acc_ref[...] + b_ref[...]                    # (TN, Dp) f32
        y_ref[...] = y
        if mask_rows:  # exclude zero-padded batch rows from the BN statistics
            row = (pl.program_id(0) * tile_n
                   + jax.lax.broadcasted_iota(jnp.int32, (tile_n, 1), 0))
            y = jnp.where(row < n_true, y, 0.0)
        # One-pass statistics: sum and sum-of-squares (single sweep over y).
        s1_ref[...] = jnp.sum(y, axis=0, keepdims=True)[None]
        s2_ref[...] = jnp.sum(y * y, axis=0, keepdims=True)[None]


# ---------------------------------------------------------------------------
# Pass 2: folded BN affine -> sigmoid gate -> rsqrt L2 normalize.
# Grid: (row tiles [parallel]).
# ---------------------------------------------------------------------------
def _gate_norm_kernel(x_ref, y_ref, scale_ref, shift_ref, o_ref):
    x = x_ref[...]
    y = y_ref[...] * scale_ref[...] + shift_ref[...]     # BN folded to scale/shift
    g = x * jax.nn.sigmoid(y)                            # GLU gate (exp on EUP)
    ssq = jnp.sum(g * g, axis=-1, keepdims=True)
    # 1 / max(||g||, 1e-12) == rsqrt(max(ssq, 1e-24)); rsqrt runs on the EUP.
    o_ref[...] = g * jax.lax.rsqrt(jnp.maximum(ssq, 1e-24))


def mimic_ce_gated_embedding_unit(x, w_t, b, gamma, beta, *, eps=1e-5):
    """x: (N, D) f32. w_t: (D, D) f32 (transpose of nn.Linear weight, y = x@w_t+b).
    b, gamma, beta: (D,) or (1, D) f32.  Returns (N, D) f32."""
    n, d = x.shape
    b = jnp.asarray(b, jnp.float32).reshape(1, d)
    gamma = jnp.asarray(gamma, jnp.float32).reshape(1, d)
    beta = jnp.asarray(beta, jnp.float32).reshape(1, d)

    # ----- layout plumbing: lane-dense features, sublane-aligned row tiles ----
    d_pad = _round_up(d, 128)                     # lane-dense feature axis
    tile_n = min(128, _round_up(n, 8))            # row tile (8-sublane aligned)
    n_pad = _round_up(n, tile_n)
    tile_k = next(t for t in (512, 256, 128) if d_pad % t == 0)  # matmul K tile

    xp = jnp.pad(x.astype(jnp.float32), ((0, n_pad - n), (0, d_pad - d)))
    wp = jnp.pad(jnp.asarray(w_t, jnp.float32), ((0, d_pad - d), (0, d_pad - d)))
    bp = jnp.pad(b, ((0, 0), (0, d_pad - d)))
    gp = jnp.pad(gamma, ((0, 0), (0, d_pad - d)))
    btp = jnp.pad(beta, ((0, 0), (0, d_pad - d)))

    num_i = n_pad // tile_n
    num_k = d_pad // tile_k

    kernel1 = functools.partial(_linear_stats_kernel,
                                n_true=n, tile_n=tile_n, mask_rows=(n_pad != n))

    y, s1p, s2p = pl.pallas_call(
        kernel1,
        out_shape=(
            jax.ShapeDtypeStruct((n_pad, d_pad), jnp.float32),   # y = xW + b
            jax.ShapeDtypeStruct((num_i, 1, d_pad), jnp.float32),  # per-tile sum
            jax.ShapeDtypeStruct((num_i, 1, d_pad), jnp.float32),  # per-tile sumsq
        ),
        grid_spec=pltpu.PrefetchScalarGridSpec(
            num_scalar_prefetch=0,
            grid=(num_i, num_k),
            in_specs=[
                pl.BlockSpec((tile_n, tile_k), lambda i, k: (i, k)),   # x (bf16)
                pl.BlockSpec((tile_k, d_pad), lambda i, k: (k, 0)),    # W  (bf16)
                pl.BlockSpec((1, d_pad), lambda i, k: (0, 0)),         # bias
            ],
            out_specs=(
                pl.BlockSpec((tile_n, d_pad), lambda i, k: (i, 0)),
                pl.BlockSpec((1, 1, d_pad), lambda i, k: (i, 0, 0)),
                pl.BlockSpec((1, 1, d_pad), lambda i, k: (i, 0, 0)),
            ),
            scratch_shapes=[pltpu.VMEM((tile_n, d_pad), jnp.float32)],
        ),
        compiler_params=pltpu.CompilerParams(
            dimension_semantics=("parallel", "arbitrary"),
            vmem_limit_bytes=48 * 1024 * 1024,   # explicit, fits v7x's 64 MiB VMEM
        ),
    )(xp.astype(jnp.bfloat16), wp.astype(jnp.bfloat16), bp)

    # ----- tiny O(D) cross-tile BN reduction + folded affine (plain JAX) ------
    s1 = jnp.sum(s1p, axis=(0, 1))                       # (d_pad,)
    s2 = jnp.sum(s2p, axis=(0, 1))
    mean = s1 / n
    var = jnp.maximum(s2 / n - mean * mean, 0.0)         # biased variance (BN train)
    scale = gp * jax.lax.rsqrt(var + eps)[None, :]       # (1, d_pad)
    shift = btp - mean[None, :] * scale                  # (1, d_pad)

    out_pad = pl.pallas_call(
        _gate_norm_kernel,
        out_shape=jax.ShapeDtypeStruct((n_pad, d_pad), jnp.float32),
        grid_spec=pltpu.PrefetchScalarGridSpec(
            num_scalar_prefetch=0,
            grid=(num_i,),
            in_specs=[
                pl.BlockSpec((tile_n, d_pad), lambda i: (i, 0)),   # x (f32)
                pl.BlockSpec((tile_n, d_pad), lambda i: (i, 0)),   # y
                pl.BlockSpec((1, d_pad), lambda i: (0, 0)),        # scale
                pl.BlockSpec((1, d_pad), lambda i: (0, 0)),        # shift
            ],
            out_specs=pl.BlockSpec((tile_n, d_pad), lambda i: (i, 0)),
        ),
        compiler_params=pltpu.CompilerParams(
            dimension_semantics=("parallel",),
            vmem_limit_bytes=48 * 1024 * 1024,
        ),
    )(xp, y, scale, shift)

    return out_pad[:n, :d]


def _reference(x, w_t, b, gamma, beta, eps=1e-5, matmul_dtype=jnp.float32):
    y = jnp.dot(x.astype(matmul_dtype), w_t.astype(matmul_dtype),
                preferred_element_type=jnp.float32) + b.reshape(1, -1)
    mean = jnp.mean(y, axis=0, keepdims=True)
    var = jnp.mean((y - mean) ** 2, axis=0, keepdims=True)
    y = (y - mean) / jnp.sqrt(var + eps) * gamma.reshape(1, -1) + beta.reshape(1, -1)
    g = x * jax.nn.sigmoid(y)
    nrm = jnp.linalg.norm(g, axis=-1, keepdims=True)
    return g / jnp.maximum(nrm, 1e-12)


if __name__ == "__main__":
    N, D = 8, 32  # batch=8, input_dimension=32 (output_dimension unused by forward)

    key = jax.random.PRNGKey(0)
    kx, kw, kb, kg, kbt = jax.random.split(key, 5)

    x = jax.random.normal(kx, (N, D), dtype=jnp.float32)
    lim = 1.0 / float(D) ** 0.5
    w = jax.random.uniform(kw, (D, D), jnp.float32, -lim, lim)  # nn.Linear weight
    w_t = w.T
    b = jax.random.uniform(kb, (D,), jnp.float32, -lim, lim)
    gamma = 1.0 + 0.1 * jax.random.normal(kg, (D,), dtype=jnp.float32)
    beta = 0.1 * jax.random.normal(kbt, (D,), dtype=jnp.float32)

    out = jax.block_until_ready(
        mimic_ce_gated_embedding_unit(x, w_t, b, gamma, beta))
    assert out.shape == (N, D)

    # Tight check against a reference using the same bf16-input / f32-accumulate
    # matmul that the kernel feeds to the MXU.
    ref_bf16 = _reference(x, w_t, b, gamma, beta, matmul_dtype=jnp.bfloat16)
    assert jnp.allclose(out, ref_bf16, atol=2e-4, rtol=2e-4), \
        "mismatch vs bf16-matmul reference"

    # Sanity check against the full-f32 PyTorch-semantics reference (bf16 MXU
    # inputs introduce a small error that BatchNorm largely renormalizes away).
    ref_f32 = _reference(x, w_t, b, gamma, beta, matmul_dtype=jnp.float32)
    assert float(jnp.max(jnp.abs(out - ref_f32))) < 5e-2, \
        "mismatch vs f32 reference"

    print("KERNEL_OK")
</pallas_src>

<mosaic_0001>
module attributes {stable_mosaic.version = 11 : i64} {
  func.func @_linear_stats_kernel(%arg0: i32, %arg1: i32, %arg2: memref<8x128xbf16, #tpu.memory_space<vmem>>, %arg3: memref<128x128xbf16, #tpu.memory_space<vmem>>, %arg4: memref<1x128xf32, #tpu.memory_space<vmem>>, %arg5: memref<8x128xf32, #tpu.memory_space<vmem>>, %arg6: memref<1x1x128xf32, #tpu.memory_space<vmem>>, %arg7: memref<1x1x128xf32, #tpu.memory_space<vmem>>, %arg8: memref<8x128xf32, #tpu.memory_space<vmem>>) attributes {dimension_semantics = [#tpu.dimension_semantics<parallel>, #tpu.dimension_semantics<arbitrary>], iteration_bounds = array<i64: 1, 1>, scalar_prefetch = 0 : i64, scratch_operands = 1 : i64, tpu.core_type = #tpu.core_type<tc>, window_params = [{transform_indices = @transform_0, window_bounds = array<i64: 8, 128>}, {transform_indices = @transform_1, window_bounds = array<i64: 128, 128>}, {pipeline_mode = #tpu.pipeline_mode<synchronous>, transform_indices = @transform_2, window_bounds = array<i64: 1, 128>}, {transform_indices = @transform_3, window_bounds = array<i64: 8, 128>}, {transform_indices = @transform_4, window_bounds = array<i64: 1, 1, 128>}, {transform_indices = @transform_5, window_bounds = array<i64: 1, 1, 128>}]} {
    %c0_i32 = arith.constant 0 : i32
    %0 = arith.cmpi eq, %arg1, %c0_i32 : i32
    %1 = arith.extui %0 : i1 to i32
    %c0_i32_0 = arith.constant 0 : i32
    %2 = arith.cmpi ne, %1, %c0_i32_0 : i32
    scf.if %2 {
      %cst_10 = arith.constant 0.000000e+00 : f32
      %12 = vector.broadcast %cst_10 : f32 to vector<8x128xf32>
      %c0_11 = arith.constant 0 : index
      %c0_12 = arith.constant 0 : index
      %13 = vector.load %arg8[%c0_11, %c0_12] : memref<8x128xf32, #tpu.memory_space<vmem>>, vector<8x128xf32>
      tpu.vector_store %arg8[%c0_11, %c0_12], %12 {strides = array<i32>} : memref<8x128xf32, #tpu.memory_space<vmem>>, vector<8x128xf32>,
    } else {
    }
    %c0 = arith.constant 0 : index
    %c0_1 = arith.constant 0 : index
    %3 = vector.load %arg8[%c0, %c0_1] : memref<8x128xf32, #tpu.memory_space<vmem>>, vector<8x128xf32>
    %c0_2 = arith.constant 0 : index
    %c0_3 = arith.constant 0 : index
    %4 = vector.load %arg2[%c0_2, %c0_3] : memref<8x128xbf16, #tpu.memory_space<vmem>>, vector<8x128xbf16>
    %c0_4 = arith.constant 0 : index
    %c0_5 = arith.constant 0 : index
    %5 = vector.load %arg3[%c0_4, %c0_5] : memref<128x128xbf16, #tpu.memory_space<vmem>>, vector<128x128xbf16>
    %cst = arith.constant dense<0.000000e+00> : vector<8x128xf32>
    %6 = tpu.matmul %4, %5, %cst {dimension_numbers = #tpu.dot_dimension_numbers<[1], [0], [0], [1], [0, 0, 1, 1], [], []>} : vector<8x128xbf16>, vector<128x128xbf16>, vector<8x128xf32> -> vector<8x128xf32>
    %7 = arith.addf %3, %6 : vector<8x128xf32>
    %c0_6 = arith.constant 0 : index
    %c0_7 = arith.constant 0 : index
    %8 = vector.load %arg8[%c0_6, %c0_7] : memref<8x128xf32, #tpu.memory_space<vmem>>, vector<8x128xf32>
    tpu.vector_store %arg8[%c0_6, %c0_7], %7 {strides = array<i32>} : memref<8x128xf32, #tpu.memory_space<vmem>>, vector<8x128xf32>,
    %c0_i32_8 = arith.constant 0 : i32
    %9 = arith.cmpi eq, %arg1, %c0_i32_8 : i32
    %10 = arith.extui %9 : i1 to i32
    %c0_i32_9 = arith.constant 0 : i32
    %11 = arith.cmpi ne, %10, %c0_i32_9 : i32
    scf.if %11 {
      %c0_10 = arith.constant 0 : index
      %c0_11 = arith.constant 0 : index
      %12 = vector.load %arg8[%c0_10, %c0_11] : memref<8x128xf32, #tpu.memory_space<vmem>>, vector<8x128xf32>
      %c0_12 = arith.constant 0 : index
      %c0_13 = arith.constant 0 : index
      %13 = vector.load %arg4[%c0_12, %c0_13] : memref<1x128xf32, #tpu.memory_space<vmem>>, vector<1x128xf32>
      %14 = vector.broadcast %13 : vector<1x128xf32> to vector<8x128xf32>
      %15 = arith.addf %12, %14 : vector<8x128xf32>
      %c0_14 = arith.constant 0 : index
      %c0_15 = arith.constant 0 : index
      %16 = vector.load %arg5[%c0_14, %c0_15] : memref<8x128xf32, #tpu.memory_space<vmem>>, vector<8x128xf32>
      tpu.vector_store %arg5[%c0_14, %c0_15], %15 {strides = array<i32>} : memref<8x128xf32, #tpu.memory_space<vmem>>, vector<8x128xf32>,
      %cst_16 = arith.constant dense<0.000000e+00> : vector<128xf32>
      %17 = vector.multi_reduction <add>, %15, %cst_16 [0] : vector<8x128xf32> to vector<128xf32>
      %18 = vector.shape_cast %17 : vector<128xf32> to vector<1x128xf32>
      %19 = vector.shape_cast %18 : vector<1x128xf32> to vector<1x1x128xf32>
      %c0_17 = arith.constant 0 : index
      %c0_18 = arith.constant 0 : index
      %c0_19 = arith.constant 0 : index
      %20 = vector.load %arg6[%c0_17, %c0_18, %c0_19] : memref<1x1x128xf32, #tpu.memory_space<vmem>>, vector<1x1x128xf32>
      tpu.vector_store %arg6[%c0_17, %c0_18, %c0_19], %19 {strides = array<i32>} : memref<1x1x128xf32, #tpu.memory_space<vmem>>, vector<1x1x128xf32>,
      %21 = arith.mulf %15, %15 : vector<8x128xf32>
      %cst_20 = arith.constant dense<0.000000e+00> : vector<128xf32>
      %22 = vector.multi_reduction <add>, %21, %cst_20 [0] : vector<8x128xf32> to vector<128xf32>
      %23 = vector.shape_cast %22 : vector<128xf32> to vector<1x128xf32>
      %24 = vector.shape_cast %23 : vector<1x128xf32> to vector<1x1x128xf32>
      %c0_21 = arith.constant 0 : index
      %c0_22 = arith.constant 0 : index
      %c0_23 = arith.constant 0 : index
      %25 = vector.load %arg7[%c0_21, %c0_22, %c0_23] : memref<1x1x128xf32, #tpu.memory_space<vmem>>, vector<1x1x128xf32>
      tpu.vector_store %arg7[%c0_21, %c0_22, %c0_23], %24 {strides = array<i32>} : memref<1x1x128xf32, #tpu.memory_space<vmem>>, vector<1x1x128xf32>,
    } else {
    }
    return
  }
  func.func @transform_0(%arg0: i32, %arg1: i32) -> (i32, i32) {
    %c0_i32 = arith.constant 0 : i32
    return %arg0, %arg1 : i32, i32
  }
  func.func @transform_1(%arg0: i32, %arg1: i32) -> (i32, i32) {
    %c0_i32 = arith.constant 0 : i32
    %c0_i32_0 = arith.constant 0 : i32
    return %arg1, %c0_i32 : i32, i32
  }
  func.func @transform_2(%arg0: i32, %arg1: i32) -> (i32, i32) {
    %c0_i32 = arith.constant 0 : i32
    %c0_i32_0 = arith.constant 0 : i32
    %c0_i32_1 = arith.constant 0 : i32
    return %c0_i32, %c0_i32_0 : i32, i32
  }
  func.func @transform_3(%arg0: i32, %arg1: i32) -> (i32, i32) {
    %c0_i32 = arith.constant 0 : i32
    %c0_i32_0 = arith.constant 0 : i32
    return %arg0, %c0_i32 : i32, i32
  }
  func.func @transform_4(%arg0: i32, %arg1: i32) -> (i32, i32, i32) {
    %c0_i32 = arith.constant 0 : i32
    %c0_i32_0 = arith.constant 0 : i32
    %c0_i32_1 = arith.constant 0 : i32
    return %arg0, %c0_i32, %c0_i32_0 : i32, i32, i32
  }
  func.func @transform_5(%arg0: i32, %arg1: i32) -> (i32, i32, i32) {
    %c0_i32 = arith.constant 0 : i32
    %c0_i32_0 = arith.constant 0 : i32
    %c0_i32_1 = arith.constant 0 : i32
    return %arg0, %c0_i32, %c0_i32_0 : i32, i32, i32
  }
}

</mosaic_0001>

<bundles_post_ra>
// kernel: tpu_custom_call.1
= control target key start
LH: loop header
LB: loop body
LE: loop exit
PB: predicated region body
PF: predicated region fallthrough
CT: control target
= control target key end

     0   :  { %11 = vsyncpa [#allocation4], 0  ;;  %s440_s0 = inlined_call_operand.hbm [shape: bf16[8,128], index: 0, kind: input, shape index: {}]   ;;  %s441_s1 = inlined_call_operand.hbm [shape: bf16[128,128], index: 1, kind: input, shape index: {}]   ;;  %s442_s2 = inlined_call_operand.vmem [shape: f32[1,128], index: 2, kind: input, shape index: {}]   ;;  %s443_s3 = inlined_call_operand.hbm [shape: f32[8,128], index: 3, kind: output, shape index: {0}]   ;;  %s444_s4 = inlined_call_operand.hbm [shape: f32[1,1,128], index: 4, kind: output, shape index: {1}]   ;;  %s445_s5 = inlined_call_operand.hbm [shape: f32[1,1,128], index: 5, kind: output, shape index: {2}]  }
   0x1   :  { %12 = vsyncpa [#allocation7], 0 }
   0x2   :  { %13 = vsyncpa [#allocation5], 0 }
   0x3   :  { %14 = vsyncpa [#allocation10], 0  ;;  %s20_s20 = sshll.u32 %s440_s0, 4  ;;  %s385_s21 = smov [#allocation3]   ;;  %s21_s20 = int_to_ptr.hbm [resolvable:$true] %s20_s20 }
   0x4   :  { %s22_s22 = sshll.u32 %s385_s21, 4  ;;  %s30_s25 = sshll.u32 %s441_s1, 4  ;;  %s23_s22 = int_to_ptr.vmem [resolvable:$true] %s22_s22  ;;  %s31_s25 = int_to_ptr.hbm [resolvable:$true] %s30_s25 }
   0x5   :  { %25 = dma.hbm_to_vmem [thread:$0]  %s21_s20, 64, %s23_s22, [#allocation4]  }
   0x6   :  { %s386_s26 = smov [#allocation6]   ;;  %s387_s28 = smov 64  }
   0x7   :  { %s32_s27 = sshll.u32 %s386_s26, 4  ;;  %s388_s29 = smov 4   ;;  %s33_s27 = int_to_ptr.vmem [resolvable:$true] %s32_s27 }
   0x8   :  { %38 = dma.hbm_to_vmem [thread:$0]  %s31_s25, 1024, %s33_s27, [#allocation7], %s387_s28, %s387_s28, %s388_s29  }
   0x9   :  { %377 = dma.done.wait [#allocation4], 64  }
   0xa   :  { %378 = vsyncadd [#allocation4], 4294967232 }
   0xb   :  { %379 = dma.done.wait [#allocation7], 1024  }
   0xc   :  { %380 = vsyncadd [#allocation7], 4294966272  ;;  %v248_v0 = vld [vmem:[#allocation6 + $0x38] sm:$0xff]  ;;  %v247_v1 = vld [vmem:[#allocation6 + $0x30] sm:$0xff]  ;;  %s389_s30 = smov [#allocation8]   ;;  %s167_s9 = sshll.u32 %s443_s3, 4  ;;  %s168_s9 = int_to_ptr.hbm [resolvable:$true] %s167_s9 }
   0xd   :  { %120 = vmatpush.bf16.msra.mxu0 %v248_v0  ;;  %v246_v2 = vld [vmem:[#allocation6 + $0x28] sm:$0xff]  ;;  %v245_v3 = vld [vmem:[#allocation6 + $0x20] sm:$0xff]  ;;  %v244_v4 = vld [vmem:[#allocation6 + $0x18] sm:$0xff]  ;;  %s165_s6 = sshll.u32 %s389_s30, 4  ;;  %s178_s3 = sshll.u32 %s444_s4, 4  ;;  %s166_s6 = int_to_ptr.vmem [resolvable:$true] %s165_s6  ;;  %s179_s3 = int_to_ptr.hbm [resolvable:$true] %s178_s3 }
   0xe   :  { %v243_v5 = vld [vmem:[#allocation6 + $0x10] sm:$0xff]  ;;  %v242_v6 = vld [vmem:[#allocation6 + $0x8] sm:$0xff]  ;;  %v241_v7 = vld [vmem:[#allocation6] sm:$0xff]  ;;  %s391_s13 = smov [#allocation11]   ;;  %s189_s17 = sshll.u32 %s445_s5, 4  ;;  %s190_s17 = int_to_ptr.hbm [resolvable:$true] %s189_s17 }
   0xf   :  { %v55_v8 = vld [vmem:[#allocation3] sm:$0xf]  ;;  %s187_s14 = sshll.u32 %s391_s13, 4  ;;  %s188_s14 = int_to_ptr.vmem [resolvable:$true] %s187_s14 }
  0x10   :  { %v256_v9 = vld [vmem:[%s442_s2] ss:$0 sm:$0xff]  ;;  %s390_s2 = smov [#allocation9]  }
  0x11   :  { %121 = vmatpush.bf16.msra.mxu0 %v247_v1  ;;  %s176_s10 = sshll.u32 %s390_s2, 4  ;;  %s177_s10 = int_to_ptr.vmem [resolvable:$true] %s176_s10 }
  0x15   :  { %122 = vmatpush.bf16.msra.mxu0 %v246_v2 }
  0x19   :  { %123 = vmatpush.bf16.msra.mxu0 %v245_v3 }
  0x1d   :  { %124 = vmatpush.bf16.msra.mxu0 %v244_v4 }
  0x21   :  { %125 = vmatpush.bf16.msra.mxu0 %v243_v5 }
  0x25   :  { %126 = vmatpush.bf16.msra.mxu0 %v242_v6 }
  0x29   :  { %127 = vmatpush.bf16.msra.mxu0 %v241_v7 }
  0x2c   :  { %128 = vmatmul.bf16.vlgmr.msra.gmra.mxu0 %v55_v8 }
  0xa9   :  { %v129_v10 = vpop.f32.mrf.mxu0 }
  0xaa   :  { %v143_v11 = vadd.f32 %v256_v9, %v129_v10 }
  0xac   :  { %v145_v12 = vrot.slane %v143_v11, 4  ;;  %v152_v13 = vmul.f32 %v143_v11, %v143_v11  ;;  %144 = vst [vmem:[#allocation8] sm:$0xff] %v143_v11 }
  0xad   :  { %170 = dma.vmem_to_hbm [thread:$0]  %s166_s6, 128, %s168_s9, [#allocation5]  }
  0xae   :  { %v146_v14 = vadd.f32 %v145_v12, %v143_v11  ;;  %v153_v15 = vrot.slane %v152_v13, 4 }
  0xb0   :  { %v154_v16 = vadd.f32 %v153_v15, %v152_v13  ;;  %v147_v17 = vrot.slane %v146_v14, 2 }
  0xb1   :  { %v131_v18 = vpop.f32.mrf.mxu0 }
  0xb2   :  { %v148_v19 = vadd.f32 %v147_v17, %v146_v14  ;;  %v155_v20 = vrot.slane %v154_v16, 2 }
  0xb4   :  { %v149_v21 = vrot.slane %v148_v19, 1  ;;  %v156_v22 = vadd.f32 %v155_v20, %v154_v16 }
  0xb6   :  { %v150_v23 = vadd.f32 %v149_v21, %v148_v19  ;;  %v157_v24 = vrot.slane %v156_v22, 1 }
  0xb8   :  { %151 = vst [vmem:[#allocation9] sm:$0x1] %v150_v23  ;;  %v158_v25 = vadd.f32 %v157_v24, %v156_v22 }
  0xb9   :  { %181 = dma.vmem_to_hbm [thread:$0]  %s177_s10, 16, %s179_s3, [#allocation10]  }
  0xba   :  { %159 = vst [vmem:[#allocation11] sm:$0x1] %v158_v25 }
  0xbb   :  { %192 = dma.vmem_to_hbm [thread:$0]  %s188_s14, 16, %s190_s17, [#allocation10]  }
  0xbc   :  { %381 = dma.done.wait [#allocation5], 128  }
  0xbd   :  { %382 = vsyncadd [#allocation5], 4294967168 }
  0xbe   :  { %383 = dma.done.wait [#allocation10], 32  }
  0xbf   :  { %384 = vsyncadd [#allocation10], 4294967264 }
  0xc0   :  { %205 = vsyncpa [#allocation4], 1 }
  0xc1   :  { %206 = vsyncpa [#allocation7], 1 }
  0xc2   :  { %207 = vsyncpa [#allocation5], 1 }
  0xc3   :  { %208 = vsyncpa [#allocation10], 1 }

</bundles_post_ra>
